<compile_context>
chip_gen: v7x
topology: tpu7x:2x2x1
jax: 0.10.0
libtpu: 0.0.40
codegen_flags: <defaults>
</compile_context>

<pallas_src>
import functools

import jax
import jax.numpy as jnp
from jax.experimental import pallas as pl
from jax.experimental.pallas import tpu as pltpu

LANE = 128
SUBLANE = 8


def _round_up(n, m):
    return ((n + m - 1) // m) * m


def mlp_value_kernel(x_ref, w1_ref, b1_ref, w2_ref, b2_ref, o_ref):
    # fc1: [TB, I](bf16) @ [I, M](bf16) -> f32 accumulate on MXU
    x_bf16 = x_ref[...].astype(jnp.bfloat16)
    h = jnp.dot(x_bf16, w1_ref[...], preferred_element_type=jnp.float32)
    # bias + ReLU in f32 on the VPU (v5e has no bf16 VALU path)
    h = jnp.maximum(h + b1_ref[...], 0.0)
    # fc2: [TB, M](bf16) @ [M, OP](bf16) -> f32 accumulate
    v = jnp.dot(h.astype(jnp.bfloat16), w2_ref[...],
                preferred_element_type=jnp.float32)
    o_ref[...] = (v + b2_ref[...]).astype(o_ref.dtype)


def prepare_params(w1, b1, w2, b2):
    """One-time weight preprocessing. Cache the result outside the hot loop.

    w1: [I, M], b1: [M], w2: [M, O], b2: [O]   (transposed vs torch's [out,in])
    Returns (w1_bf16, b1_2d, w2_pad_bf16, b2_pad_2d, O).
    """
    I, M = w1.shape
    O = w2.shape[1]
    OP = _round_up(max(O, LANE), LANE)          # lane-dense (unmasked) stores
    w1_bf16 = w1.astype(jnp.bfloat16)
    w2_pad = jnp.pad(w2.astype(jnp.bfloat16), ((0, 0), (0, OP - O)))
    b1_2d = b1.reshape(1, M).astype(jnp.float32)
    b2_2d = jnp.pad(b2.reshape(1, O).astype(jnp.float32),
                    ((0, 0), (0, OP - O)))
    return w1_bf16, b1_2d, w2_pad, b2_2d, O


@functools.partial(jax.jit, static_argnames=("out_features", "batch_tile"))
def mlp_value_forward(x, w1_bf16, b1_2d, w2_pad, b2_2d, *,
                      out_features, batch_tile=512):
    """Pallas forward: relu(x @ w1 + b1) @ w2 + b2 (weights pre-prepared)."""
    B, I = x.shape
    M = w1_bf16.shape[1]
    OP = w2_pad.shape[1]

    # Batch tile: big (default 512 rows) to amortize ~0.35 us/step overhead,
    # clamped to the batch, forced to a multiple of 8 sublanes.
    TB = min(batch_tile, _round_up(B, SUBLANE))
    TB = max(SUBLANE, (TB // SUBLANE) * SUBLANE)
    grid = (pl.cdiv(B, TB),)   # partial last block handled by Pallas; no x pad

    out = pl.pallas_call(
        mlp_value_kernel,
        out_shape=jax.ShapeDtypeStruct((B, OP), x.dtype),
        grid=grid,
        in_specs=[
            pl.BlockSpec((TB, I), lambda i: (i, 0)),   # x tile (pipelined)
            pl.BlockSpec((I, M), lambda i: (0, 0)),    # W1 resident in VMEM
            pl.BlockSpec((1, M), lambda i: (0, 0)),    # b1 resident
            pl.BlockSpec((M, OP), lambda i: (0, 0)),   # W2 resident (padded)
            pl.BlockSpec((1, OP), lambda i: (0, 0)),   # b2 resident (padded)
        ],
        out_specs=pl.BlockSpec((TB, OP), lambda i: (i, 0)),
        compiler_params=pltpu.CompilerParams(
            dimension_semantics=("parallel",)),
        # NOTE: at TB<=1024 and these feature sizes the double-buffered tiles
        # are well under v5e's 16 MiB scoped-VMEM default; set vmem_limit_bytes
        # here only if TB or I are pushed far beyond that.
    )(x, w1_bf16, b1_2d, w2_pad, b2_2d)

    # TODO(synk): for very large B, pack 16 rows of O=8 into one 128-wide lane
    # row (or emit bf16) to kill the 16x padded-output write amplification.
    return out[:, :out_features]


def init_linear_params(key, fan_in, fan_out, dtype=jnp.float32):
    # Mirror torch.nn.Linear default init: U(-1/sqrt(fan_in), 1/sqrt(fan_in)).
    kw, kb = jax.random.split(key)
    bound = 1.0 / jnp.sqrt(fan_in)
    # stored as [fan_in, fan_out] (transpose of torch's [out, in])
    w = jax.random.uniform(kw, (fan_in, fan_out), dtype, -bound, bound)
    b = jax.random.uniform(kb, (fan_out,), dtype, -bound, bound)
    return w, b


if __name__ == "__main__":
    # Small shapes consistent with Model(inputsize, middlesize, outputsize).
    B, inputsize, middlesize, outputsize = 64, 256, 128, 8

    key = jax.random.PRNGKey(0)
    kx, k1, k2 = jax.random.split(key, 3)

    x = jax.random.normal(kx, (B, inputsize), jnp.float32)
    w1, b1 = init_linear_params(k1, inputsize, middlesize)
    w2, b2 = init_linear_params(k2, middlesize, outputsize)

    # One-time prep (cache these across forward calls in a real RL loop).
    w1p, b1p, w2p, b2p, O = prepare_params(w1, b1, w2, b2)
    w1p, b1p, w2p, b2p = jax.block_until_ready((w1p, b1p, w2p, b2p))

    # B=64 <= batch_tile -> single tile, grid=(1,).
    out = mlp_value_forward(x, w1p, b1p, w2p, b2p, out_features=O)
    out = jax.block_until_ready(out)
    assert out.shape == (B, outputsize)

    # Pure-JAX reference mirroring the same bf16-operand / f32-accumulate math.
    h_ref = jnp.dot(x.astype(jnp.bfloat16), w1.astype(jnp.bfloat16),
                    preferred_element_type=jnp.float32) + b1
    h_ref = jnp.maximum(h_ref, 0.0)
    ref = jnp.dot(h_ref.astype(jnp.bfloat16), w2.astype(jnp.bfloat16),
                  preferred_element_type=jnp.float32) + b2
    assert jnp.allclose(out, ref, atol=1e-2, rtol=1e-2)

    # Sanity vs full-f32 math (loose tolerance for bf16 operands).
    ref_f32 = jnp.maximum(x @ w1 + b1, 0.0) @ w2 + b2
    assert jnp.allclose(out, ref_f32, atol=5e-2, rtol=5e-2)

    # Exercise the multi-step ("parallel") grid path with a ragged batch too.
    B2 = 100
    x2 = jax.random.normal(jax.random.PRNGKey(1), (B2, inputsize), jnp.float32)
    out2 = jax.block_until_ready(
        mlp_value_forward(x2, w1p, b1p, w2p, b2p, out_features=O,
                          batch_tile=64))
    ref2 = jnp.maximum(x2 @ w1 + b1, 0.0) @ w2 + b2
    assert out2.shape == (B2, outputsize)
    assert jnp.allclose(out2, ref2, atol=5e-2, rtol=5e-2)

    print("KERNEL_OK")
</pallas_src>

<mosaic_0001>
module attributes {stable_mosaic.version = 11 : i64} {
  func.func @mlp_value_kernel(%arg0: i32, %arg1: memref<64x256xf32, #tpu.memory_space<vmem>>, %arg2: memref<256x128xbf16, #tpu.memory_space<vmem>>, %arg3: memref<1x128xf32, #tpu.memory_space<vmem>>, %arg4: memref<128x128xbf16, #tpu.memory_space<vmem>>, %arg5: memref<1x128xf32, #tpu.memory_space<vmem>>, %arg6: memref<64x128xf32, #tpu.memory_space<vmem>>) attributes {dimension_semantics = [#tpu.dimension_semantics<parallel>], iteration_bounds = array<i64: 1>, scalar_prefetch = 0 : i64, scratch_operands = 0 : i64, tpu.core_type = #tpu.core_type<tc>, window_params = [{transform_indices = @transform_0, window_bounds = array<i64: 64, 256>}, {pipeline_mode = #tpu.pipeline_mode<synchronous>, transform_indices = @transform_1, window_bounds = array<i64: 256, 128>}, {pipeline_mode = #tpu.pipeline_mode<synchronous>, transform_indices = @transform_2, window_bounds = array<i64: 1, 128>}, {pipeline_mode = #tpu.pipeline_mode<synchronous>, transform_indices = @transform_3, window_bounds = array<i64: 128, 128>}, {pipeline_mode = #tpu.pipeline_mode<synchronous>, transform_indices = @transform_4, window_bounds = array<i64: 1, 128>}, {transform_indices = @transform_5, window_bounds = array<i64: 64, 128>}]} {
    %c0 = arith.constant 0 : index
    %c0_0 = arith.constant 0 : index
    %0 = vector.load %arg1[%c0, %c0_0] : memref<64x256xf32, #tpu.memory_space<vmem>>, vector<64x256xf32>
    %1 = arith.truncf %0 : vector<64x256xf32> to vector<64x256xbf16>
    %c0_1 = arith.constant 0 : index
    %c0_2 = arith.constant 0 : index
    %2 = vector.load %arg2[%c0_1, %c0_2] : memref<256x128xbf16, #tpu.memory_space<vmem>>, vector<256x128xbf16>
    %cst = arith.constant dense<0.000000e+00> : vector<64x128xf32>
    %3 = tpu.matmul %1, %2, %cst {dimension_numbers = #tpu.dot_dimension_numbers<[1], [0], [0], [1], [0, 0, 1, 1], [], []>} : vector<64x256xbf16>, vector<256x128xbf16>, vector<64x128xf32> -> vector<64x128xf32>
    %c0_3 = arith.constant 0 : index
    %c0_4 = arith.constant 0 : index
    %4 = vector.load %arg3[%c0_3, %c0_4] : memref<1x128xf32, #tpu.memory_space<vmem>>, vector<1x128xf32>
    %5 = vector.broadcast %4 : vector<1x128xf32> to vector<64x128xf32>
    %6 = arith.addf %3, %5 : vector<64x128xf32>
    %cst_5 = arith.constant 0.000000e+00 : f32
    %7 = vector.broadcast %cst_5 : f32 to vector<64x128xf32>
    %8 = arith.maximumf %6, %7 : vector<64x128xf32>
    %9 = arith.truncf %8 : vector<64x128xf32> to vector<64x128xbf16>
    %c0_6 = arith.constant 0 : index
    %c0_7 = arith.constant 0 : index
    %10 = vector.load %arg4[%c0_6, %c0_7] : memref<128x128xbf16, #tpu.memory_space<vmem>>, vector<128x128xbf16>
    %cst_8 = arith.constant dense<0.000000e+00> : vector<64x128xf32>
    %11 = tpu.matmul %9, %10, %cst_8 {dimension_numbers = #tpu.dot_dimension_numbers<[1], [0], [0], [1], [0, 0, 1, 1], [], []>} : vector<64x128xbf16>, vector<128x128xbf16>, vector<64x128xf32> -> vector<64x128xf32>
    %c0_9 = arith.constant 0 : index
    %c0_10 = arith.constant 0 : index
    %12 = vector.load %arg5[%c0_9, %c0_10] : memref<1x128xf32, #tpu.memory_space<vmem>>, vector<1x128xf32>
    %13 = vector.broadcast %12 : vector<1x128xf32> to vector<64x128xf32>
    %14 = arith.addf %11, %13 : vector<64x128xf32>
    %c0_11 = arith.constant 0 : index
    %c0_12 = arith.constant 0 : index
    %15 = vector.load %arg6[%c0_11, %c0_12] : memref<64x128xf32, #tpu.memory_space<vmem>>, vector<64x128xf32>
    tpu.vector_store %arg6[%c0_11, %c0_12], %14 {strides = array<i32>} : memref<64x128xf32, #tpu.memory_space<vmem>>, vector<64x128xf32>,
    return
  }
  func.func @transform_0(%arg0: i32) -> (i32, i32) {
    %c0_i32 = arith.constant 0 : i32
    %c0_i32_0 = arith.constant 0 : i32
    return %arg0, %c0_i32 : i32, i32
  }
  func.func @transform_1(%arg0: i32) -> (i32, i32) {
    %c0_i32 = arith.constant 0 : i32
    %c0_i32_0 = arith.constant 0 : i32
    %c0_i32_1 = arith.constant 0 : i32
    return %c0_i32, %c0_i32_0 : i32, i32
  }
  func.func @transform_2(%arg0: i32) -> (i32, i32) {
    %c0_i32 = arith.constant 0 : i32
    %c0_i32_0 = arith.constant 0 : i32
    %c0_i32_1 = arith.constant 0 : i32
    return %c0_i32, %c0_i32_0 : i32, i32
  }
  func.func @transform_3(%arg0: i32) -> (i32, i32) {
    %c0_i32 = arith.constant 0 : i32
    %c0_i32_0 = arith.constant 0 : i32
    %c0_i32_1 = arith.constant 0 : i32
    return %c0_i32, %c0_i32_0 : i32, i32
  }
  func.func @transform_4(%arg0: i32) -> (i32, i32) {
    %c0_i32 = arith.constant 0 : i32
    %c0_i32_0 = arith.constant 0 : i32
    %c0_i32_1 = arith.constant 0 : i32
    return %c0_i32, %c0_i32_0 : i32, i32
  }
  func.func @transform_5(%arg0: i32) -> (i32, i32) {
    %c0_i32 = arith.constant 0 : i32
    %c0_i32_0 = arith.constant 0 : i32
    return %arg0, %c0_i32 : i32, i32
  }
}

</mosaic_0001>

<bundles_post_ra>
// kernel: mlp_value_forward.1
= control target key start
LH: loop header
LB: loop body
LE: loop exit
PB: predicated region body
PF: predicated region fallthrough
CT: control target
= control target key end

     0   :  { %10 = vsyncpa [#allocation3], 0  ;;  %s760_s0 = inlined_call_operand.hbm [shape: f32[64,256], index: 0, kind: input, shape index: {}]   ;;  %s761_s1 = inlined_call_operand.hbm [shape: bf16[256,128], index: 1, kind: input, shape index: {}]   ;;  %s762_s2 = inlined_call_operand.vmem [shape: f32[1,128], index: 2, kind: input, shape index: {}]   ;;  %s763_s3 = inlined_call_operand.hbm [shape: bf16[128,128], index: 3, kind: input, shape index: {}]   ;;  %s764_s4 = inlined_call_operand.vmem [shape: f32[1,128], index: 4, kind: input, shape index: {}]   ;;  %s765_s5 = inlined_call_operand.vmem [shape: f32[64,128], index: 5, kind: output, shape index: {}]  }
   0x1   :  { %11 = vsyncpa [#allocation5], 0  ;;  %s651_s18 = smov [#allocation4]   ;;  %s581_s22 = scalar_lea.hbm %s761_s1, 2048 }
   0x2   :  { %s29_s19 = sshll.u32 %s651_s18, 4  ;;  %p582_p0 = scmp.ne.s32.totalorder %s761_s1, %s581_s22  ;;  %s30_s19 = int_to_ptr.vmem [resolvable:$true] %s29_s19 }
   0x3   :  { %p585_p1 = scmp.lt.u32.totalorder %s581_s22, %s761_s1 }
   0x5   :  { %p587_p2 = pnand %p585_p1, %p582_p0 }
   0x7   :  { %590 = shalt.err (!%p587_p2)
}
   0x8   :  { %s591_s27 = scalar_lea.vmem %s30_s19, 2048  ;;  %p596_p4 = scmp.lt.s32.totalorder %s30_s19, %s30_s19 }
   0x9   :  { %p592_p3 = scmp.ne.s32.totalorder %s30_s19, %s591_s27  ;;  %p597_p5 = scmp.lt.s32.totalorder %s591_s27, %s591_s27 }
   0xb   :  { %p598_p6 = por %p597_p5, %p596_p4 }
   0xd   :  { %p599_p7 = pnand %p598_p6, %p592_p3 }
   0xf   :  { %602 = shalt.err (!%p599_p7)
}
  0x10   :  { %s652_s28 = smov 64   ;;  %s653_s29 = smov 4  }
  0x11   :  { %35 = dma.hbm_to_vmem [thread:$0]  %s761_s1, 2048, %s30_s19, [#allocation5], %s652_s28, %s652_s28, %s653_s29  }
  0x12   :  { %s654_s7 = smov [#allocation2]   ;;  %s603_s11 = scalar_lea.hbm %s760_s0, 2048 }
  0x13   :  { %s17_s8 = sshll.u32 %s654_s7, 4  ;;  %p604_p8 = scmp.ne.s32.totalorder %s760_s0, %s603_s11  ;;  %s18_s8 = int_to_ptr.vmem [resolvable:$true] %s17_s8 }
  0x14   :  { %p607_p9 = scmp.lt.u32.totalorder %s603_s11, %s760_s0 }
  0x16   :  { %p609_p10 = pnand %p607_p9, %p604_p8 }
  0x18   :  { %612 = shalt.err (!%p609_p10)
}
  0x19   :  { %s613_s16 = scalar_lea.vmem %s18_s8, 2048  ;;  %p618_p12 = scmp.lt.s32.totalorder %s18_s8, %s18_s8 }
  0x1a   :  { %p614_p11 = scmp.ne.s32.totalorder %s18_s8, %s613_s16  ;;  %p619_p13 = scmp.lt.s32.totalorder %s613_s16, %s613_s16 }
  0x1c   :  { %p620_p0 = por %p619_p13, %p618_p12 }
  0x1e   :  { %p621_p1 = pnand %p620_p0, %p614_p11 }
  0x20   :  { %624 = shalt.err (!%p621_p1)
}
  0x21   :  { %s655_s1 = smov 256   ;;  %s656_s17 = smov 16  }
  0x22   :  { %23 = dma.hbm_to_vmem [thread:$0]  %s760_s0, 2048, %s18_s8, [#allocation3], %s655_s1, %s655_s1, %s656_s17  }
  0x23   :  { %s657_s20 = smov [#allocation6]   ;;  %s625_s24 = scalar_lea.hbm %s763_s3, 1024 }
  0x24   :  { %s43_s21 = sshll.u32 %s657_s20, 4  ;;  %p626_p2 = scmp.ne.s32.totalorder %s763_s3, %s625_s24  ;;  %s44_s21 = int_to_ptr.vmem [resolvable:$true] %s43_s21 }
  0x25   :  { %p629_p3 = scmp.lt.u32.totalorder %s625_s24, %s763_s3 }
  0x27   :  { %p631_p4 = pnand %p629_p3, %p626_p2 }
  0x29   :  { %634 = shalt.err (!%p631_p4)
}
  0x2a   :  { %s635_s6 = scalar_lea.vmem %s44_s21, 1024  ;;  %p640_p6 = scmp.lt.s32.totalorder %s44_s21, %s44_s21 }
  0x2b   :  { %p636_p5 = scmp.ne.s32.totalorder %s44_s21, %s635_s6  ;;  %p641_p7 = scmp.lt.s32.totalorder %s635_s6, %s635_s6 }
  0x2d   :  { %p642_p8 = por %p641_p7, %p640_p6 }
  0x2f   :  { %p643_p9 = pnand %p642_p8, %p636_p5 }
  0x31   :  { %646 = shalt.err (!%p643_p9)
}
  0x32   :  { %49 = dma.hbm_to_vmem [thread:$0]  %s763_s3, 1024, %s44_s21, [#allocation5], %s652_s28, %s652_s28, %s653_s29  }
  0x33   :  { %647 = dma.done.wait [#allocation3], 2048  }
  0x34   :  { %648 = vsyncadd [#allocation3], 4294965248 }
  0x35   :  { %649 = dma.done.wait [#allocation5], 3072  }
  0x36   :  { %650 = vsyncadd [#allocation5], 4294964224  ;;  %v557_v0 = vld [vmem:[#allocation4 + $0x40] sm:$0xff]   ;;  %v559_v2 = vld [vmem:[#allocation4 + $0x48] sm:$0xff]  }
  0x37   :  { %v558_v1 = vld [vmem:[#allocation4] sm:$0xff]   ;;  %474 = vmatprep.subr.bf16.mxu0 %v557_v0  ;;  %v560_v3 = vld [vmem:[#allocation4 + $0x8] sm:$0xff]   ;;  %v561_v4 = vld [vmem:[#allocation4 + $0x50] sm:$0xff]  }
  0x38   :  { %475 = vmatpush3.bf16.msra.mxu0 %v558_v1  ;;  %v562_v5 = vld [vmem:[#allocation4 + $0x10] sm:$0xff]   ;;  %v563_v6 = vld [vmem:[#allocation4 + $0x58] sm:$0xff]   ;;  %v565_v8 = vld [vmem:[#allocation4 + $0x60] sm:$0xff]  }
  0x39   :  { %476 = vmatprep.subr.bf16.mxu0 %v559_v2  ;;  %v564_v7 = vld [vmem:[#allocation4 + $0x18] sm:$0xff]   ;;  %v566_v9 = vld [vmem:[#allocation4 + $0x20] sm:$0xff]   ;;  %v567_v10 = vld [vmem:[#allocation4 + $0x68] sm:$0xff]  }
  0x3a   :  { %v63_v11 = vld [vmem:[#allocation2 + $0x8] sm:$0xff]  ;;  %v65_v12 = vld [vmem:[#allocation2 + $0x18] sm:$0xff]  ;;  %v569_v15 = vld [vmem:[#allocation4 + $0x70] sm:$0xff]  }
  0x3b   :  { %v79_v13 = vpack.c.bf16 %v65_v12, %v63_v11  ;;  %v568_v14 = vld [vmem:[#allocation4 + $0x28] sm:$0xff]   ;;  %v570_v16 = vld [vmem:[#allocation4 + $0x30] sm:$0xff]   ;;  %v571_v17 = vld [vmem:[#allocation4 + $0x78] sm:$0xff]  }
  0x3c   :  { %477 = vmatpush3.bf16.msra.mxu0 %v560_v3  ;;  %v573_v18 = vld [vmem:[#allocation6] sm:$0xff]   ;;  %v574_v19 = vld [vmem:[#allocation6 + $0x8] sm:$0xff]   ;;  %v575_v20 = vld [vmem:[#allocation6 + $0x10] sm:$0xff]  }
  0x3d   :  { %478 = vmatprep.subr.bf16.mxu0 %v561_v4  ;;  %253 = vmatprep.mubr.bf16.mxu0 %v79_v13  ;;  %v572_v21 = vld [vmem:[#allocation4 + $0x38] sm:$0xff]   ;;  %v62_v22 = vld [vmem:[#allocation2] sm:$0xff]  ;;  %v64_v23 = vld [vmem:[#allocation2 + $0x10] sm:$0xff] }
  0x3e   :  { %526 = vmatprep.subr.bf16.mxu1 %v573_v18  ;;  %v67_v24 = vld [vmem:[#allocation2 + $0x28] sm:$0xff]  ;;  %v69_v25 = vld [vmem:[#allocation2 + $0x38] sm:$0xff]  ;;  %v78_v26 = vpack.c.bf16 %v64_v23, %v62_v22  ;;  %v66_v28 = vld [vmem:[#allocation2 + $0x20] sm:$0xff] }
  0x3f   :  { %527 = vmatpush3.bf16.msra.mxu1 %v573_v18  ;;  %v81_v27 = vpack.c.bf16 %v69_v25, %v67_v24  ;;  %v68_v29 = vld [vmem:[#allocation2 + $0x30] sm:$0xff]  ;;  %v71_v30 = vld [vmem:[#allocation2 + $0x48] sm:$0xff]  ;;  %v73_v31 = vld [vmem:[#allocation2 + $0x58] sm:$0xff] }
  0x40   :  { %479 = vmatpush3.bf16.msra.mxu0 %v562_v5  ;;  %528 = vmatprep.subr.bf16.mxu1 %v574_v19  ;;  %v80_v32 = vpack.c.bf16 %v68_v29, %v66_v28  ;;  %v83_v33 = vpack.c.bf16 %v73_v31, %v71_v30  ;;  %v70_v34 = vld [vmem:[#allocation2 + $0x40] sm:$0xff]  ;;  %v72_v35 = vld [vmem:[#allocation2 + $0x50] sm:$0xff]  ;;  %v75_v36 = vld [vmem:[#allocation2 + $0x68] sm:$0xff] }
  0x41   :  { %480 = vmatprep.subr.bf16.mxu0 %v563_v6  ;;  %v77_v37 = vld [vmem:[#allocation2 + $0x78] sm:$0xff]  ;;  %v82_v38 = vpack.c.bf16 %v72_v35, %v70_v34  ;;  %v74_v40 = vld [vmem:[#allocation2 + $0x60] sm:$0xff]  ;;  %v76_v41 = vld [vmem:[#allocation2 + $0x70] sm:$0xff] }
  0x42   :  { %v85_v39 = vpack.c.bf16 %v77_v37, %v75_v36  ;;  %v84_v42 = vpack.c.bf16 %v76_v41, %v74_v40  ;;  %v576_v43 = vld [vmem:[#allocation6 + $0x18] sm:$0xff]   ;;  %v577_v44 = vld [vmem:[#allocation6 + $0x20] sm:$0xff]   ;;  %v578_v45 = vld [vmem:[#allocation6 + $0x28] sm:$0xff]  }
  0x43   :  { %529 = vmatpush3.bf16.msra.mxu1 %v574_v19  ;;  %v579_v46 = vld [vmem:[#allocation6 + $0x30] sm:$0xff]   ;;  %v580_v47 = vld [vmem:[#allocation6 + $0x38] sm:$0xff]   ;;  %v448_v50 = vld [vmem:[%s762_s2] ss:$0 sm:$0xff] }
  0x44   :  { %481 = vmatpush3.bf16.msra.mxu0 %v564_v7  ;;  %530 = vmatprep.subr.bf16.mxu1 %v575_v20  ;;  %v465_v29 = vld [vmem:[%s764_s4] ss:$0 sm:$0xff] }
  0x45   :  { %482 = vmatprep.subr.bf16.mxu0 %v565_v8 }
  0x47   :  { %531 = vmatpush3.bf16.msra.mxu1 %v575_v20 }
  0x48   :  { %483 = vmatpush3.bf16.msra.mxu0 %v566_v9  ;;  %532 = vmatprep.subr.bf16.mxu1 %v576_v43 }
  0x49   :  { %484 = vmatprep.subr.bf16.mxu0 %v567_v10 }
  0x4b   :  { %533 = vmatpush3.bf16.msra.mxu1 %v576_v43 }
  0x4c   :  { %485 = vmatpush3.bf16.msra.mxu0 %v568_v14  ;;  %534 = vmatprep.subr.bf16.mxu1 %v577_v44 }
  0x4d   :  { %486 = vmatprep.subr.bf16.mxu0 %v569_v15 }
  0x4f   :  { %535 = vmatpush3.bf16.msra.mxu1 %v577_v44 }
  0x50   :  { %487 = vmatpush3.bf16.msra.mxu0 %v570_v16  ;;  %536 = vmatprep.subr.bf16.mxu1 %v578_v45 }
  0x51   :  { %488 = vmatprep.subr.bf16.mxu0 %v571_v17 }
  0x53   :  { %537 = vmatpush3.bf16.msra.mxu1 %v578_v45 }
  0x54   :  { %489 = vmatpush3.bf16.msra.mxu0 %v572_v21  ;;  %538 = vmatprep.subr.bf16.mxu1 %v579_v46 }
  0x57   :  { %254 = vmatmul.mubr.bf16.vlgmr.msra.gmra.mrb[0].mxu0 %v78_v26  ;;  %539 = vmatpush3.bf16.msra.mxu1 %v579_v46 }
  0x58   :  { %261 = vmatprep.mubr.bf16.mxu0 %v81_v27  ;;  %540 = vmatprep.subr.bf16.mxu1 %v580_v47 }
  0x5b   :  { %541 = vmatpush3.bf16.msra.mxu1 %v580_v47 }
  0x5f   :  { %262 = vmatmul.mubr.bf16.gmra.mrb[4].mxu0 %v80_v32 }
  0x60   :  { %269 = vmatprep.mubr.bf16.mxu0 %v83_v33 }
  0x67   :  { %270 = vmatmul.mubr.bf16.gmra.mrb[8].mxu0 %v82_v38 }
  0x68   :  { %277 = vmatprep.mubr.bf16.mxu0 %v85_v39 }
  0x6f   :  { %278 = vmatmul.mubr.bf16.gmra.mrb[12].mxu0 %v84_v42 }
 0x12a   :  { %v490_v48 = vpop.f32.mrb[0].mxu0 }
 0x12b   :  { %v491_v49 = vpop.f32.mrb[1].mxu0 }
 0x12c   :  { %v492_v51 = vadd.f32 %v491_v49, %v490_v48  ;;  %v493_v52 = vpop.f32.mrb[2].mxu0 }
 0x12d   :  { %v494_v53 = vpop.f32.mrb[3].mxu0 }
 0x12e   :  { %v495_v54 = vadd.f32 %v494_v53, %v493_v52  ;;  %v256_v55 = vadd.f32 %v492_v51, %v448_v50 }
 0x130   :  { %v259_v56 = vadd.f32 %v495_v54, %v448_v50  ;;  %v286_v58 = vmax.f32 %v256_v55, 0.0 }
 0x132   :  { %v496_v57 = vpop.f32.mrb[4].mxu0  ;;  %v287_v59 = vmax.f32 %v259_v56, 0.0 }
 0x133   :  { %v497_v60 = vpop.f32.mrb[5].mxu0 }
 0x134   :  { %v498_v61 = vadd.f32 %v497_v60, %v496_v57  ;;  %v499_v62 = vpop.f32.mrb[6].mxu0  ;;  %v294_v63 = vpack.c.bf16 %v287_v59, %v286_v58 }
 0x135   :  { %v500_v0 = vpop.f32.mrb[7].mxu0 }
 0x136   :  { %v264_v1 = vadd.f32 %v498_v61, %v448_v50  ;;  %v501_v2 = vadd.f32 %v500_v0, %v499_v62  ;;  %542 = vmatprep.mubr.bf16.mxu1 %v294_v63 }
 0x138   :  { %v267_v3 = vadd.f32 %v501_v2, %v448_v50  ;;  %v288_v4 = vmax.f32 %v264_v1, 0.0 }
 0x13a   :  { %v289_v5 = vmax.f32 %v267_v3, 0.0  ;;  %v502_v6 = vpop.f32.mrb[8].mxu0 }
 0x13b   :  { %v503_v7 = vpop.f32.mrb[9].mxu0 }
 0x13c   :  { %v504_v8 = vadd.f32 %v503_v7, %v502_v6  ;;  %v505_v9 = vpop.f32.mrb[10].mxu0  ;;  %v295_v10 = vpack.c.bf16 %v289_v5, %v288_v4 }
 0x13d   :  { %v506_v11 = vpop.f32.mrb[11].mxu0 }
 0x13e   :  { %v272_v12 = vadd.f32 %v504_v8, %v448_v50  ;;  %v507_v13 = vadd.f32 %v506_v11, %v505_v9  ;;  %543 = vmatmul.mubr.bf16.vlgmr.msra.gmra.mrb[0].mxu1 %v295_v10 }
 0x140   :  { %v275_v14 = vadd.f32 %v507_v13, %v448_v50  ;;  %v290_v15 = vmax.f32 %v272_v12, 0.0 }
 0x142   :  { %v291_v16 = vmax.f32 %v275_v14, 0.0  ;;  %v508_v17 = vpop.f32.mrb[12].mxu0 }
 0x143   :  { %v509_v18 = vpop.f32.mrb[13].mxu0 }
 0x144   :  { %v510_v19 = vadd.f32 %v509_v18, %v508_v17  ;;  %v511_v20 = vpop.f32.mrb[14].mxu0  ;;  %v296_v21 = vpack.c.bf16 %v291_v16, %v290_v15 }
 0x145   :  { %v512_v22 = vpop.f32.mrb[15].mxu0 }
 0x146   :  { %v280_v23 = vadd.f32 %v510_v19, %v448_v50  ;;  %v513_v24 = vadd.f32 %v512_v22, %v511_v20  ;;  %546 = vmatprep.mubr.bf16.mxu1 %v296_v21 }
 0x148   :  { %v283_v25 = vadd.f32 %v513_v24, %v448_v50  ;;  %v292_v26 = vmax.f32 %v280_v23, 0.0 }
 0x14a   :  { %v293_v27 = vmax.f32 %v283_v25, 0.0 }
 0x14c   :  { %v297_v28 = vpack.c.bf16 %v293_v27, %v292_v26 }
 0x14e   :  { %547 = vmatmul.mubr.bf16.gmra.mrb[4].mxu1 %v297_v28 }
 0x211   :  { %v544_v30 = vpop.f32.mrb[0].mxu1 }
 0x212   :  { %v412_v31 = vadd.f32 %v544_v30, %v465_v29  ;;  %v403_v32 = vpop.f32.mrb[1].mxu1 }
 0x213   :  { %v404_v33 = vadd.f32 %v465_v29, %v403_v32  ;;  %v545_v34 = vpop.f32.mrb[2].mxu1 }
 0x214   :  { %436 = vst [vmem:[%s765_s5 + $0x10] sm:$0xff] %v412_v31  ;;  %v415_v35 = vadd.f32 %v545_v34, %v465_v29  ;;  %v406_v36 = vpop.f32.mrb[3].mxu1 }
 0x215   :  { %434 = vst [vmem:[%s765_s5] sm:$0xff] %v404_v33  ;;  %v407_v37 = vadd.f32 %v465_v29, %v406_v36 }
 0x216   :  { %437 = vst [vmem:[%s765_s5 + $0x18] sm:$0xff] %v415_v35 }
 0x217   :  { %435 = vst [vmem:[%s765_s5 + $0x8] sm:$0xff] %v407_v37 }
 0x221   :  { %v548_v38 = vpop.f32.mrb[4].mxu1 }
 0x222   :  { %v428_v39 = vadd.f32 %v548_v38, %v465_v29  ;;  %v419_v40 = vpop.f32.mrb[5].mxu1 }
 0x223   :  { %v420_v41 = vadd.f32 %v465_v29, %v419_v40  ;;  %v549_v42 = vpop.f32.mrb[6].mxu1 }
 0x224   :  { %440 = vst [vmem:[%s765_s5 + $0x30] sm:$0xff] %v428_v39  ;;  %v431_v43 = vadd.f32 %v549_v42, %v465_v29  ;;  %v422_v44 = vpop.f32.mrb[7].mxu1 }
 0x225   :  { %438 = vst [vmem:[%s765_s5 + $0x20] sm:$0xff] %v420_v41  ;;  %v423_v45 = vadd.f32 %v465_v29, %v422_v44 }
 0x226   :  { %441 = vst [vmem:[%s765_s5 + $0x38] sm:$0xff] %v431_v43 }
 0x227   :  { %439 = vst [vmem:[%s765_s5 + $0x28] sm:$0xff] %v423_v45 }
 0x228   :  { %446 = vsyncpa [#allocation3], 1 }
 0x229   :  { %447 = vsyncpa [#allocation5], 1 }

</bundles_post_ra>
